<compile_context>
chip_gen: v7x
topology: tpu7x:2x2x1
jax: 0.10.0
libtpu: 0.0.40
codegen_flags: <defaults>
</compile_context>

<pallas_src>
import functools

import jax
import jax.numpy as jnp
from jax.experimental import pallas as pl
from jax.experimental.pallas import tpu as pltpu


_TARGET_TILE_BYTES = 4 * 1024 * 1024      # per-step DMA sweet spot (review: 2 -> 4 MiB)
_VMEM_HEADROOM = 8 * 1024 * 1024          # leave room for compiler-internal scratch
_FALLBACK_VMEM_BYTES = 64 * 1024 * 1024   # smallest physical VMEM across v5e/v6e/v7x


def _vmem_budget():
    """Usable scoped-VMEM budget on this chip (physical capacity minus headroom)."""
    try:
        cap = int(pltpu.get_tpu_info().vmem_capacity_bytes)
    except Exception:  # conservative fallback if the query is unavailable
        cap = _FALLBACK_VMEM_BYTES
    return max(16 * 1024 * 1024, cap - _VMEM_HEADROOM)


def _vmem_limit(nbytes, budget):
    return int(min(max(nbytes, 16 * 1024 * 1024), budget))


def _pick_spatial_tile(s, limit):
    """Pick the lane tile TS for the spatial axis.  Returns (TS, needs_mask).

    TS is either the full S (small case), a multiple of 128 that divides S (no tail),
    or the largest multiple of 128 <= limit with a masked tail tile.
    """
    if s <= limit:
        return s, False
    best_div = 0
    t = 128
    while t <= limit:
        if s % t == 0:
            best_div = t
        t += 128
    if best_div >= max(128, limit // 2):
        return best_div, False           # good dividing tile found -> no masking needed
    ts = max(128, (limit // 128) * 128)
    return ts, (s % ts != 0)


def _fc_sigmoid(avg, mx, w1t, w2t):
    """sigmoid(fc(avg) + fc(mx)) as a single 2-D matmul chain.  avg/mx: (TN, C) f32."""
    tn = avg.shape[0]
    pooled = jnp.concatenate([avg, mx], axis=0)                     # (2*TN, C)
    h = jnp.dot(pooled, w1t, preferred_element_type=jnp.float32)    # (2*TN, Hid)
    h = jnp.maximum(h, 0.0)                                         # ReLU
    y = jnp.dot(h, w2t, preferred_element_type=jnp.float32)         # (2*TN, C)
    return jax.nn.sigmoid(y[:tn] + y[tn:])                          # (TN, C)


def _fused_kernel(x_ref, w1t_ref, w2t_ref, o_ref, *, inv_s):
    """Single pass: pool + fc + sigmoid + scale with the whole (TN, C, S) slab resident."""
    x = x_ref[...]                                                  # (TN, C, S)
    ssum = jnp.sum(x, axis=-1, dtype=jnp.float32)                   # (TN, C)
    smax = jnp.max(x, axis=-1).astype(jnp.float32)                  # (TN, C)
    att = _fc_sigmoid(ssum * inv_s, smax,
                      w1t_ref[...].astype(jnp.float32),
                      w2t_ref[...].astype(jnp.float32))             # (TN, C)
    # NOTE: for bf16 inputs the scale is applied in bf16 (reference multiplies in f32);
    # acceptable for CBAM, use a looser tolerance when testing bf16.
    o_ref[...] = x * att[:, :, None].astype(x.dtype)


def _pool_fc_kernel(x_ref, w1t_ref, w2t_ref, att_ref, sum_ref, max_ref,
                    *, ts, s_total, inv_s, needs_mask):
    """Accumulate per-(n, c) sum/max over S tiles; fc + sigmoid on the last S tile."""
    s_idx = pl.program_id(1)
    x = x_ref[...]                                                  # (TN, C, TS)

    if needs_mask:
        # Tail tile: lanes past S hold undefined data -> mask before reducing.
        lane = jax.lax.broadcasted_iota(jnp.int32, x.shape, 2)
        valid = lane < (s_total - s_idx * ts)
        x_for_sum = jnp.where(valid, x, jnp.zeros_like(x))
        x_for_max = jnp.where(valid, x, jnp.full_like(x, -jnp.inf))
    else:
        x_for_sum = x
        x_for_max = x

    part_sum = jnp.sum(x_for_sum, axis=-1, dtype=jnp.float32)       # (TN, C)
    part_max = jnp.max(x_for_max, axis=-1).astype(jnp.float32)      # (TN, C)

    @pl.when(s_idx == 0)
    def _init():
        sum_ref[...] = part_sum
        max_ref[...] = part_max

    @pl.when(s_idx > 0)
    def _accumulate():
        sum_ref[...] = sum_ref[...] + part_sum
        max_ref[...] = jnp.maximum(max_ref[...], part_max)

    @pl.when(s_idx == pl.num_programs(1) - 1)
    def _finalize():
        att = _fc_sigmoid(sum_ref[...] * inv_s, max_ref[...],
                          w1t_ref[...].astype(jnp.float32),
                          w2t_ref[...].astype(jnp.float32))         # (TN, C)
        att_ref[...] = att[:, :, None].astype(att_ref.dtype)


def _scale_kernel(att_ref, x_ref, o_ref):
    # Apply the per-(n, c) attention weight; stays in the input dtype (bf16 stays bf16).
    o_ref[...] = x_ref[...] * att_ref[...]


def channel_attention(x, w1, w2, *, target_tile_bytes=_TARGET_TILE_BYTES,
                      force_two_pass=False):
    """x: (N, C, D, H, W); w1: (C//r, C); w2: (C, C//r). Returns same shape/dtype as x."""
    N, C, D, H, W = x.shape
    S = D * H * W
    x3 = x.reshape(N, C, S)
    w1t = jnp.transpose(w1)          # (C, Hid)   -> kernel does pooled @ w1t
    w2t = jnp.transpose(w2)          # (Hid, C)   -> kernel does h @ w2t

    itemsize = jnp.dtype(x.dtype).itemsize
    budget = _vmem_budget()
    slab = C * S * itemsize          # one batch's x slab in bytes

    # ---- Fused single-pass fast path: whole (TN, C, S) slab resident in VMEM ----------
    if not force_two_pass:
        tn_f = max(1, min(N, target_tile_bytes // max(1, slab)))
        while N % tn_f != 0:
            tn_f -= 1
        block_f = tn_f * slab
        # in + out, both double-buffered, plus f32 working set -> ~6x block + slop.
        fused_vmem = 6 * block_f + (2 << 20)
        if fused_vmem <= budget:
            out3 = pl.pallas_call(
                functools.partial(_fused_kernel, inv_s=1.0 / S),
                out_shape=jax.ShapeDtypeStruct((N, C, S), x.dtype),
                grid=(N // tn_f,),
                in_specs=[
                    pl.BlockSpec((tn_f, C, S), lambda n: (n, 0, 0)),
                    pl.BlockSpec(w1t.shape, lambda n: (0, 0)),   # constant -> resident
                    pl.BlockSpec(w2t.shape, lambda n: (0, 0)),   # constant -> resident
                ],
                out_specs=pl.BlockSpec((tn_f, C, S), lambda n: (n, 0, 0)),
                compiler_params=pltpu.CompilerParams(
                    dimension_semantics=("parallel",),
                    vmem_limit_bytes=_vmem_limit(fused_vmem, budget),
                ),
            )(x3, w1t, w2t)
            return out3.reshape(N, C, D, H, W)

    # ---- Two-pass plan: S tiled in 128-lane multiples (masked tail) -------------------
    ts_limit = max(128, target_tile_bytes // max(1, C * itemsize))
    TS, needs_mask = _pick_spatial_tile(S, ts_limit)
    TN = max(1, min(N, target_tile_bytes // max(1, C * TS * itemsize)))
    while N % TN != 0:
        TN -= 1

    n_tiles = N // TN
    s_tiles = pl.cdiv(S, TS)
    tile_bytes = TN * C * TS * itemsize

    # Pass 1: pooled sum/max over S (f32 scratch accumulators) + fc + sigmoid.
    att = pl.pallas_call(
        functools.partial(_pool_fc_kernel, ts=TS, s_total=S, inv_s=1.0 / S,
                          needs_mask=needs_mask),
        out_shape=jax.ShapeDtypeStruct((N, C, 1), x.dtype),
        grid=(n_tiles, s_tiles),
        in_specs=[
            pl.BlockSpec((TN, C, TS), lambda n, s: (n, 0, s)),
            pl.BlockSpec(w1t.shape, lambda n, s: (0, 0)),        # constant -> resident
            pl.BlockSpec(w2t.shape, lambda n, s: (0, 0)),        # constant -> resident
        ],
        out_specs=pl.BlockSpec((TN, C, 1), lambda n, s: (n, 0, 0)),
        scratch_shapes=[pltpu.VMEM((TN, C), jnp.float32),        # running sum
                        pltpu.VMEM((TN, C), jnp.float32)],       # running max
        compiler_params=pltpu.CompilerParams(
            dimension_semantics=("parallel", "arbitrary"),
            # one big input, double-buffered, plus tiny weights / att / scratch
            vmem_limit_bytes=_vmem_limit(2 * tile_bytes + (4 << 20), budget),
        ),
    )(x3, w1t, w2t)

    # Pass 2: out = x * att, fully parallel grid (tail blocks use partial writeback).
    out3 = pl.pallas_call(
        _scale_kernel,
        out_shape=jax.ShapeDtypeStruct((N, C, S), x.dtype),
        grid=(n_tiles, s_tiles),
        in_specs=[
            pl.BlockSpec((TN, C, 1), lambda n, s: (n, 0, 0)),
            pl.BlockSpec((TN, C, TS), lambda n, s: (n, 0, s)),
        ],
        out_specs=pl.BlockSpec((TN, C, TS), lambda n, s: (n, 0, s)),
        compiler_params=pltpu.CompilerParams(
            dimension_semantics=("parallel", "parallel"),
            # x in + out, both double-buffered, plus the tiny att block
            vmem_limit_bytes=_vmem_limit(4 * tile_bytes + (4 << 20), budget),
        ),
    )(att, x3)

    return out3.reshape(N, C, D, H, W)


def reference(x, w1, w2):
    xf = x.astype(jnp.float32)
    avg = jnp.mean(xf, axis=(2, 3, 4))            # (N, C)
    mx = jnp.max(xf, axis=(2, 3, 4))              # (N, C)

    def fc(p):  # (N, C)
        h = jnp.maximum(p @ w1.T.astype(jnp.float32), 0.0)
        return h @ w2.T.astype(jnp.float32)

    att = jax.nn.sigmoid(fc(avg) + fc(mx))        # (N, C)
    return (xf * att[:, :, None, None, None]).astype(x.dtype)


if __name__ == "__main__":
    key = jax.random.PRNGKey(0)
    k_x, k_w1, k_w2, k_x2 = jax.random.split(key, 4)

    # Module defaults: in_planes=32, ratio=16 -> hidden=2.  Small spatial shapes.
    N, C, ratio = 2, 32, 16
    Hid = C // ratio

    # Conv3d 1x1x1, no bias -> plain (out, in) channel-mixing matrices.
    w1 = jax.random.normal(k_w1, (Hid, C), dtype=jnp.float32) * 0.1
    w2 = jax.random.normal(k_w2, (C, Hid), dtype=jnp.float32) * 0.1

    # 1) Fused single-pass fast path (slab fits comfortably in VMEM).
    x = jax.random.normal(k_x, (N, C, 4, 8, 8), dtype=jnp.float32)
    out = jax.block_until_ready(channel_attention(x, w1, w2))
    ref = reference(x, w1, w2)
    assert out.shape == x.shape and out.dtype == x.dtype
    assert jnp.allclose(out, ref, atol=1e-5, rtol=1e-5), "fused path mismatch"

    # 2) Two-pass tiled path, exercising the masked non-128-multiple spatial tail
    #    (S = 5*5*8 = 200, forced tiny tile target so TS = 128 with a 72-lane tail).
    x2 = jax.random.normal(k_x2, (N, C, 5, 5, 8), dtype=jnp.float32)
    out2 = jax.block_until_ready(
        channel_attention(x2, w1, w2,
                          target_tile_bytes=128 * C * 4, force_two_pass=True))
    ref2 = reference(x2, w1, w2)
    assert out2.shape == x2.shape and out2.dtype == x2.dtype
    assert jnp.allclose(out2, ref2, atol=1e-5, rtol=1e-5), "two-pass path mismatch"

    print("KERNEL_OK")
</pallas_src>

<mosaic_0001>
module attributes {stable_mosaic.version = 11 : i64} {
  func.func @_fused_kernel(%arg0: i32, %arg1: memref<2x32x256xf32, #tpu.memory_space<vmem>>, %arg2: memref<32x2xf32, #tpu.memory_space<vmem>>, %arg3: memref<2x32xf32, #tpu.memory_space<vmem>>, %arg4: memref<2x32x256xf32, #tpu.memory_space<vmem>>) attributes {dimension_semantics = [#tpu.dimension_semantics<parallel>], iteration_bounds = array<i64: 1>, scalar_prefetch = 0 : i64, scratch_operands = 0 : i64, tpu.core_type = #tpu.core_type<tc>, window_params = [{transform_indices = @transform_0, window_bounds = array<i64: 2, 32, 256>}, {pipeline_mode = #tpu.pipeline_mode<synchronous>, transform_indices = @transform_1, window_bounds = array<i64: 32, 2>}, {pipeline_mode = #tpu.pipeline_mode<synchronous>, transform_indices = @transform_2, window_bounds = array<i64: 2, 32>}, {transform_indices = @transform_3, window_bounds = array<i64: 2, 32, 256>}]} {
    %c0 = arith.constant 0 : index
    %c0_0 = arith.constant 0 : index
    %c0_1 = arith.constant 0 : index
    %0 = vector.load %arg1[%c0, %c0_0, %c0_1] : memref<2x32x256xf32, #tpu.memory_space<vmem>>, vector<2x32x256xf32>
    %cst = arith.constant dense<0.000000e+00> : vector<2x32xf32>
    %1 = vector.multi_reduction <add>, %0, %cst [2] : vector<2x32x256xf32> to vector<2x32xf32>
    %cst_2 = arith.constant dense<0xFF800000> : vector<2x32xf32>
    %2 = vector.multi_reduction <maximumf>, %0, %cst_2 [2] : vector<2x32x256xf32> to vector<2x32xf32>
    %cst_3 = arith.constant 3.906250e-03 : f32
    %3 = vector.broadcast %cst_3 : f32 to vector<2x32xf32>
    %4 = arith.mulf %1, %3 : vector<2x32xf32>
    %c0_4 = arith.constant 0 : index
    %c0_5 = arith.constant 0 : index
    %5 = vector.load %arg2[%c0_4, %c0_5] : memref<32x2xf32, #tpu.memory_space<vmem>>, vector<32x2xf32>
    %c0_6 = arith.constant 0 : index
    %c0_7 = arith.constant 0 : index
    %6 = vector.load %arg3[%c0_6, %c0_7] : memref<2x32xf32, #tpu.memory_space<vmem>>, vector<2x32xf32>
    %7 = tpu.concatenate %4, %2 in 0 : vector<2x32xf32>, vector<2x32xf32> -> vector<4x32xf32>
    %cst_8 = arith.constant dense<0.000000e+00> : vector<4x2xf32>
    %8 = tpu.matmul %7, %5, %cst_8 {dimension_numbers = #tpu.dot_dimension_numbers<[1], [0], [0], [1], [0, 0, 1, 1], [], []>} : vector<4x32xf32>, vector<32x2xf32>, vector<4x2xf32> -> vector<4x2xf32>
    %cst_9 = arith.constant 0.000000e+00 : f32
    %9 = vector.broadcast %cst_9 : f32 to vector<4x2xf32>
    %10 = arith.maximumf %8, %9 : vector<4x2xf32>
    %cst_10 = arith.constant dense<0.000000e+00> : vector<4x32xf32>
    %11 = tpu.matmul %10, %6, %cst_10 {dimension_numbers = #tpu.dot_dimension_numbers<[1], [0], [0], [1], [0, 0, 1, 1], [], []>} : vector<4x2xf32>, vector<2x32xf32>, vector<4x32xf32> -> vector<4x32xf32>
    %12 = vector.extract_strided_slice %11 {offsets = [0, 0], sizes = [2, 32], strides = [1, 1]} : vector<4x32xf32> to vector<2x32xf32>
    %13 = vector.extract_strided_slice %11 {offsets = [2, 0], sizes = [2, 32], strides = [1, 1]} : vector<4x32xf32> to vector<2x32xf32>
    %14 = arith.addf %12, %13 : vector<2x32xf32>
    %15 = arith.negf %14 : vector<2x32xf32>
    %16 = math.exp %15 : vector<2x32xf32>
    %cst_11 = arith.constant 1.000000e+00 : f32
    %17 = vector.broadcast %cst_11 : f32 to vector<2x32xf32>
    %18 = arith.addf %17, %16 : vector<2x32xf32>
    %19 = arith.divf %17, %18 : vector<2x32xf32>
    %20 = vector.shape_cast %19 : vector<2x32xf32> to vector<2x32x1xf32>
    %21 = vector.broadcast %20 : vector<2x32x1xf32> to vector<2x32x256xf32>
    %22 = arith.mulf %0, %21 : vector<2x32x256xf32>
    %c0_12 = arith.constant 0 : index
    %c0_13 = arith.constant 0 : index
    %c0_14 = arith.constant 0 : index
    %23 = vector.load %arg4[%c0_12, %c0_13, %c0_14] : memref<2x32x256xf32, #tpu.memory_space<vmem>>, vector<2x32x256xf32>
    tpu.vector_store %arg4[%c0_12, %c0_13, %c0_14], %22 {strides = array<i32>} : memref<2x32x256xf32, #tpu.memory_space<vmem>>, vector<2x32x256xf32>,
    return
  }
  func.func @transform_0(%arg0: i32) -> (i32, i32, i32) {
    %c0_i32 = arith.constant 0 : i32
    %c0_i32_0 = arith.constant 0 : i32
    %c0_i32_1 = arith.constant 0 : i32
    return %arg0, %c0_i32, %c0_i32_0 : i32, i32, i32
  }
  func.func @transform_1(%arg0: i32) -> (i32, i32) {
    %c0_i32 = arith.constant 0 : i32
    %c0_i32_0 = arith.constant 0 : i32
    %c0_i32_1 = arith.constant 0 : i32
    return %c0_i32, %c0_i32_0 : i32, i32
  }
  func.func @transform_2(%arg0: i32) -> (i32, i32) {
    %c0_i32 = arith.constant 0 : i32
    %c0_i32_0 = arith.constant 0 : i32
    %c0_i32_1 = arith.constant 0 : i32
    return %c0_i32, %c0_i32_0 : i32, i32
  }
  func.func @transform_3(%arg0: i32) -> (i32, i32, i32) {
    %c0_i32 = arith.constant 0 : i32
    %c0_i32_0 = arith.constant 0 : i32
    %c0_i32_1 = arith.constant 0 : i32
    return %arg0, %c0_i32, %c0_i32_0 : i32, i32, i32
  }
}

</mosaic_0001>

<bundles_post_ra>
// kernel: tpu_custom_call.1
= control target key start
LH: loop header
LB: loop body
LE: loop exit
PB: predicated region body
PF: predicated region fallthrough
CT: control target
= control target key end

     0   :  { %8 = vsyncpa [#allocation3], 0  ;;  %s729_s0 = inlined_call_operand.hbm [shape: f32[2,32,256], index: 0, kind: input, shape index: {}]   ;;  %s730_s1 = inlined_call_operand.vmem [shape: f32[32,2], index: 1, kind: input, shape index: {}]   ;;  %s731_s2 = inlined_call_operand.vmem [shape: f32[2,32], index: 2, kind: input, shape index: {}]   ;;  %s732_s3 = inlined_call_operand.hbm [shape: f32[2,32,256], index: 3, kind: output, shape index: {}]  }
   0x1   :  { %9 = vsyncpa [#allocation4], 0  ;;  %s555_s12 = smov [#allocation2]   ;;  %s507_s16 = scalar_lea.hbm %s729_s0, 2048 }
   0x2   :  { %s15_s13 = sshll.u32 %s555_s12, 4  ;;  %p508_p0 = scmp.ne.s32.totalorder %s729_s0, %s507_s16  ;;  %s16_s13 = int_to_ptr.vmem [resolvable:$true] %s15_s13 }
   0x3   :  { %p511_p1 = scmp.lt.u32.totalorder %s507_s16, %s729_s0 }
   0x5   :  { %p513_p2 = pnand %p511_p1, %p508_p0 }
   0x7   :  { %516 = shalt.err (!%p513_p2)
}
   0x8   :  { %s517_s21 = scalar_lea.vmem %s16_s13, 2048  ;;  %p522_p4 = scmp.lt.s32.totalorder %s16_s13, %s16_s13 }
   0x9   :  { %p518_p3 = scmp.ne.s32.totalorder %s16_s13, %s517_s21  ;;  %p523_p5 = scmp.lt.s32.totalorder %s517_s21, %s517_s21 }
   0xb   :  { %p524_p6 = por %p523_p5, %p522_p4 }
   0xd   :  { %p525_p7 = pnand %p524_p6, %p518_p3 }
   0xf   :  { %528 = shalt.err (!%p525_p7)
}
  0x10   :  { %s556_s22 = smov 256   ;;  %s557_s23 = smov 16  }
  0x11   :  { %21 = dma.hbm_to_vmem [thread:$0]  %s729_s0, 2048, %s16_s13, [#allocation3], %s556_s22, %s556_s22, %s557_s23  }
  0x12   :  { %551 = dma.done.wait [#allocation3], 2048  }
  0x13   :  { %552 = vsyncadd [#allocation3], 4294965248  ;;  %v597_v0 = vld [vmem:[#allocation2 + $0x40] sm:$0xff]  ;;  %v599_v1 = vld [vmem:[#allocation2 + $0x48] sm:$0xff]  ;;  %v558_v35 = vmov 0.0|0.0   ;;  %vm559_vm0 = vmmov 0   ;;  %v114_v45 = vlaneseq }
  0x14   :  { %v601_v2 = vld [vmem:[#allocation2] sm:$0xff]  ;;  %v57_v3 = vadd.f32 %v599_v1, %v597_v0  ;;  %v605_v4 = vld [vmem:[#allocation2 + $0x8] sm:$0xff]  ;;  %v607_v5 = vld [vmem:[#allocation2 + $0x50] sm:$0xff]  ;;  %v81_v27 = vmax.f32 %v597_v0, %v599_v1  ;;  %490 = vmatprep.subr.bf16.mxu0 %v558_v35  ;;  %v560_v39 = vmov 0.0   ;;  %vm125_vm1 = vcmask 130112  }
  0x15   :  { %v609_v6 = vld [vmem:[#allocation2 + $0x58] sm:$0xff]  ;;  %v45_v7 = vadd.f32 %v605_v4, %v601_v2  ;;  %v613_v8 = vld [vmem:[#allocation2 + $0x10] sm:$0xff]  ;;  %v621_v12 = vld [vmem:[#allocation2 + $0x60] sm:$0xff]  ;;  %v69_v25 = vmax.f32 %v601_v2, %v605_v4  ;;  %482 = vmatprep.mubr.msk.f32.mxu0 %vm559_vm0, %v560_v39  ;;  %485 = vmatprep.subr.mxu1 %v560_v39  ;;  %v115_v48 = vand.u32 127, %v114_v45  ;;  %v673_v50 = vshrl.u32 %v114_v45, 7 }
  0x16   :  { %v615_v9 = vld [vmem:[#allocation2 + $0x18] sm:$0xff]  ;;  %58 = vadd.xlane.f32.xlu1 %v57_v3  ;;  %v60_v10 = vadd.f32 %v609_v6, %v607_v5  ;;  %v623_v13 = vld [vmem:[#allocation2 + $0x68] sm:$0xff]  ;;  %v625_v14 = vld [vmem:[#allocation2 + $0x20] sm:$0xff]  ;;  %v84_v26 = vmax.f32 %v607_v5, %v609_v6  ;;  %487 = vmatprep.mubr.msk.f32.mxu1 %vm559_vm0, %v560_v39  ;;  %vm132_vm2 = vcmask 195712   ;;  %vm139_vm3 = vcmask 261312  }
  0x17   :  { %46 = vadd.xlane.f32.xlu0 %v45_v7  ;;  %v48_v11 = vadd.f32 %v615_v9, %v613_v8  ;;  %v627_v15 = vld [vmem:[#allocation2 + $0x28] sm:$0xff]  ;;  %v63_v16 = vadd.f32 %v623_v13, %v621_v12  ;;  %v633_v18 = vld [vmem:[#allocation2 + $0x70] sm:$0xff]  ;;  %v635_v19 = vld [vmem:[#allocation2 + $0x78] sm:$0xff]  ;;  %v72_v24 = vmax.f32 %v613_v8, %v615_v9  ;;  %v87_v28 = vmax.f32 %v621_v12, %v623_v13 }
  0x18   :  { %v51_v17 = vadd.f32 %v627_v15, %v625_v14  ;;  %v637_v20 = vld [vmem:[#allocation2 + $0x30] sm:$0xff]  ;;  %v639_v21 = vld [vmem:[#allocation2 + $0x38] sm:$0xff]  ;;  %v66_v22 = vadd.f32 %v635_v19, %v633_v18  ;;  %v75_v29 = vmax.f32 %v625_v14, %v627_v15  ;;  %v90_v30 = vmax.f32 %v633_v18, %v635_v19  ;;  %v101_v32 = vld [vmem:[%s730_s1] sm:$0xff] }
  0x19   :  { %v54_v23 = vadd.f32 %v639_v21, %v637_v20  ;;  %v78_v31 = vmax.f32 %v637_v20, %v639_v21  ;;  %v102_v33 = vld [vmem:[%s730_s1 + $0x8] sm:$0xff]  ;;  %v103_v36 = vld [vmem:[%s730_s1 + $0x10] sm:$0xff]  ;;  %v104_v37 = vld [vmem:[%s730_s1 + $0x18] sm:$0xff]  ;;  %v120_v51 = vadd.s32 4294967288, %v115_v48  ;;  %v127_v52 = vadd.s32 4294967280, %v115_v48 }
  0x1a   :  { %61 = vadd.xlane.f32.xlu1 %v60_v10  ;;  %v491_v34 = vpack.c.bf16 %v102_v33, %v101_v32  ;;  %v494_v38 = vpack.c.bf16 %v104_v37, %v103_v36  ;;  %v134_v54 = vadd.s32 4294967272, %v115_v48  ;;  %v118_v56 = vsub.s32 %v115_v48, %v673_v50 }
  0x1b   :  { %49 = vadd.xlane.f32.xlu0 %v48_v11  ;;  %v123_v57 = vsub.s32 %v120_v51, %v673_v50  ;;  %v130_v59 = vsub.s32 %v127_v52, %v673_v50  ;;  %vm160_vm4 = vcmask 1041409   ;;  %vm209_vm5 = vcmask 1043459  }
  0x1c   :  { %492 = vmatpush3.bf16.msra.mxu0 %v491_v34  ;;  %v137_v10 = vsub.s32 %v134_v54, %v673_v50  ;;  %vm212_vm6 = vcmask 1041408   ;;  %vm214_vm7 = vcmask 261120   ;;  %vm289_vm8 = vcmask 15360  }
  0x1d   :  { %493 = vmatprep.subr.bf16.mxu0 %v558_v35 }
  0x1e   :  { %64 = vadd.xlane.f32.xlu1 %v63_v16 }
  0x1f   :  { %52 = vadd.xlane.f32.xlu0 %v51_v17 }
  0x20   :  { %495 = vmatpush3.bf16.msra.mxu0 %v494_v38 }
  0x22   :  { %67 = vadd.xlane.f32.xlu1 %v66_v22 }
  0x23   :  { %55 = vadd.xlane.f32.xlu0 %v54_v23 }
  0x26   :  { %73 = vmax.xlane.f32.xlu1 %v72_v24 }
  0x27   :  { %70 = vmax.xlane.f32.xlu0 %v69_v25 }
  0x2a   :  { %85 = vmax.xlane.f32.xlu1 %v84_v26 }
  0x2b   :  { %82 = vmax.xlane.f32.xlu0 %v81_v27 }
  0x2e   :  { %88 = vmax.xlane.f32.xlu1 %v87_v28 }
  0x2f   :  { %76 = vmax.xlane.f32.xlu0 %v75_v29 }
  0x32   :  { %91 = vmax.xlane.f32.xlu1 %v90_v30 }
  0x33   :  { %79 = vmax.xlane.f32.xlu0 %v78_v31 }
  0xa3   :  { %v59_v40 = vpop.xlane.xlu1 %58 }
  0xa4   :  { %v47_v41 = vpop.xlane.xlu0 %46  ;;  %v97_v60 = vmul.f32 0.00390625, %v59_v40 }
  0xa5   :  { %v93_v61 = vmul.f32 0.00390625, %v47_v41 }
  0xa6   :  { %v144_v23 = vrot.slane %v97_v60, %v118_v56 }
  0xa7   :  { %v62_v42 = vpop.xlane.xlu1 %61  ;;  %v119_v24 = vrot.slane %v93_v61, %v118_v56 }
  0xa8   :  { %v50_v43 = vpop.xlane.xlu0 %49  ;;  %v98_v58 = vmul.f32 0.00390625, %v62_v42 }
  0xa9   :  { %v94_v62 = vmul.f32 0.00390625, %v50_v43 }
  0xaa   :  { %v148_v22 = vrot.slane %v98_v58, %v123_v57  ;;  %v105_v58 = vld [vmem:[%s731_s2] sm:$0x3]  ;;  %s561_s2 = smov [#allocation5]  }
  0xab   :  { %v65_v44 = vpop.xlane.xlu1 %64  ;;  %v124_v25 = vrot.slane %v94_v62, %v123_v57  ;;  %486 = vmatpush3.msk.msra.mxu1 %vm212_vm6, %v105_v58  ;;  %s451_s7 = sshll.u32 %s561_s2, 4  ;;  %s452_s7 = int_to_ptr.vmem [resolvable:$true] %s451_s7 }
  0xac   :  { %v53_v46 = vpop.xlane.xlu0 %52  ;;  %v99_v63 = vmul.f32 0.00390625, %v65_v44  ;;  %v149_v37 = vsel %vm125_vm1, %v148_v22, %v144_v23  ;;  %s529_s8 = scalar_lea.vmem %s452_s7, 2048  ;;  %p534_p9 = scmp.lt.s32.totalorder %s452_s7, %s452_s7 }
  0xad   :  { %v95_v7 = vmul.f32 0.00390625, %v53_v46  ;;  %v126_v39 = vsel %vm125_vm1, %v124_v25, %v119_v24  ;;  %v397_v24 = vsub.s32 1, %v673_v50  ;;  %p530_p8 = scmp.ne.s32.totalorder %s452_s7, %s529_s8  ;;  %p535_p10 = scmp.lt.s32.totalorder %s529_s8, %s529_s8 }
  0xae   :  { %v153_v26 = vrot.slane %v99_v63, %v130_v59 }
  0xaf   :  { %v68_v47 = vpop.xlane.xlu1 %67  ;;  %v131_v28 = vrot.slane %v95_v7, %v130_v59  ;;  %p536_p11 = por %p535_p10, %p534_p9 }
  0xb0   :  { %v56_v49 = vpop.xlane.xlu0 %55  ;;  %v100_v11 = vmul.f32 0.00390625, %v68_v47  ;;  %v154_v40 = vsel %vm132_vm2, %v153_v26, %v149_v37 }
  0xb1   :  { %v96_v17 = vmul.f32 0.00390625, %v56_v49  ;;  %v133_v42 = vsel %vm132_vm2, %v131_v28, %v126_v39  ;;  %p537_p12 = pnand %p536_p11, %p530_p8 }
  0xb2   :  { %v158_v29 = vrot.slane %v100_v11, %v137_v10 }
  0xb3   :  { %v74_v53 = vpop.xlane.xlu1 %73  ;;  %v138_v33 = vrot.slane %v96_v17, %v137_v10  ;;  %v378_v17 = vsub.s32 0, %v673_v50 }
  0xb4   :  { %v71_v55 = vpop.xlane.xlu0 %70  ;;  %v178_v34 = vrot.slane %v74_v53, %v123_v57  ;;  %v159_v43 = vsel %vm139_vm3, %v158_v29, %v154_v40 }
  0xb5   :  { %v174_v35 = vrot.slane %v71_v55, %v118_v56  ;;  %v140_v47 = vsel %vm139_vm3, %v138_v33, %v133_v42 }
  0xb6   :  { %v161_v55 = vsel %vm160_vm4, %v159_v43, %v140_v47 }
  0xb7   :  { %v86_v3 = vpop.xlane.xlu1 %85  ;;  %v179_v48 = vsel %vm125_vm1, %v178_v34, %v174_v35 }
  0xb8   :  { %v83_v16 = vpop.xlane.xlu0 %82  ;;  %v197_v30 = vrot.slane %v86_v3, %v123_v57 }
  0xb9   :  { %v193_v31 = vrot.slane %v83_v16, %v118_v56 }
  0xbb   :  { %v89_v27 = vpop.xlane.xlu1 %88  ;;  %v198_v44 = vsel %vm125_vm1, %v197_v30, %v193_v31 }
  0xbc   :  { %v77_v32 = vpop.xlane.xlu0 %76  ;;  %v202_v36 = vrot.slane %v89_v27, %v130_v59 }
  0xbd   :  { %v183_v38 = vrot.slane %v77_v32, %v130_v59 }
  0xbe   :  { %v203_v49 = vsel %vm132_vm2, %v202_v36, %v198_v44 }
  0xbf   :  { %v92_v41 = vpop.xlane.xlu1 %91  ;;  %v184_v52 = vsel %vm132_vm2, %v183_v38, %v179_v48 }
  0xc0   :  { %v207_v45 = vrot.slane %v92_v41, %v137_v10  ;;  %v80_v46 = vpop.xlane.xlu0 %79 }
  0xc1   :  { %v188_v51 = vrot.slane %v80_v46, %v137_v10 }
  0xc2   :  { %v208_v53 = vsel %vm139_vm3, %v207_v45, %v203_v49 }
  0xc3   :  { %v189_v54 = vsel %vm139_vm3, %v188_v51, %v184_v52 }
  0xc4   :  { %v210_v56 = vsel %vm209_vm5, %v208_v53, %v189_v54 }
  0xc5   :  { %v213_v57 = vsel %vm212_vm6, %v161_v55, %v210_v56 }
  0xc6   :  { %483 = vmatmul.mubr.msk.f32.vlgmr.msra.gmra.mrb[0].mxu0 %vm214_vm7, %v213_v57 }
 0x199   :  { %v284_v59 = vpop.f32.mrb[0].mxu0 }
 0x19a   :  { %v288_v60 = vmax.f32 %v284_v59, 0.0  ;;  %v484_v61 = vpop.f32.mrb[1].mxu0 }
 0x19c   :  { %488 = vmatmul.mubr.msk.f32.vlgmr.msra.gmra.mrb[0].mxu1 %vm289_vm8, %v288_v60 }
 0x26f   :  { %v362_v62 = vpop.f32.mrb[0].mxu1 }
 0x270   :  { %v367_v63 = vrot.slane %v362_v62, 2  ;;  %v489_v3 = vpop.f32.mrb[1].mxu1 }
 0x272   :  { %v369_v7 = vadd.f32 %v367_v63, %v362_v62 }
 0x274   :  { %v466_v10 = vmul.f32 -1.442695, %v369_v7 }
 0x276   :  { %503 = vpow2.f32 %v466_v10 }
 0x280   :  { %v504_v11 = vpop.eup %503 }
 0x281   :  { %v373_v16 = vadd.f32 1.0, %v504_v11 }
 0x283   :  { %505 = vrcp.f32 %v373_v16 }
 0x28d   :  { %v506_v22 = vpop.eup %505 }
 0x28e   :  { %v379_v23 = vrot.slane %v506_v22, %v378_v17  ;;  %v398_v25 = vrot.slane %v506_v22, %v397_v24 }
 0x290   :  { %385 = vbcast.lane.b32.xlu1 %v379_v23, 264  ;;  %381 = vbcast.lane.b32.xlu0 %v379_v23, 256 }
 0x294   :  { %389 = vbcast.lane.b32.xlu1 %v379_v23, 272  ;;  %400 = vbcast.lane.b32.xlu0 %v398_v25, 256 }
 0x298   :  { %393 = vbcast.lane.b32.xlu1 %v379_v23, 280  ;;  %408 = vbcast.lane.b32.xlu0 %v398_v25, 272 }
 0x29c   :  { %404 = vbcast.lane.b32.xlu1 %v398_v25, 264 }
 0x2a0   :  { %412 = vbcast.lane.b32.xlu1 %v398_v25, 280 }
 0x302   :  { %v386_v26 = vpop.permute.xlu1 %385  ;;  %v382_v27 = vpop.permute.xlu0 %381 }
 0x303   :  { %v416_v28 = vmul.f32 %v386_v26, %v613_v8  ;;  %v417_v29 = vmul.f32 %v386_v26, %v615_v9  ;;  %v414_v30 = vmul.f32 %v382_v27, %v601_v2  ;;  %v415_v31 = vmul.f32 %v382_v27, %v605_v4 }
 0x305   :  { %432 = vst [vmem:[#allocation5 + $0x10] sm:$0xff] %v416_v28  ;;  %433 = vst [vmem:[#allocation5 + $0x18] sm:$0xff] %v417_v29 }
 0x306   :  { %430 = vst [vmem:[#allocation5] sm:$0xff] %v414_v30  ;;  %431 = vst [vmem:[#allocation5 + $0x8] sm:$0xff] %v415_v31  ;;  %v390_v50 = vpop.permute.xlu1 %389  ;;  %v401_v32 = vpop.permute.xlu0 %400 }
 0x307   :  { %v418_v33 = vmul.f32 %v390_v50, %v625_v14  ;;  %v419_v34 = vmul.f32 %v390_v50, %v627_v15  ;;  %v422_v35 = vmul.f32 %v401_v32, %v597_v0  ;;  %v423_v8 = vmul.f32 %v401_v32, %v599_v1 }
 0x309   :  { %434 = vst [vmem:[#allocation5 + $0x20] sm:$0xff] %v418_v33  ;;  %435 = vst [vmem:[#allocation5 + $0x28] sm:$0xff] %v419_v34 }
 0x30a   :  { %438 = vst [vmem:[#allocation5 + $0x40] sm:$0xff] %v422_v35  ;;  %439 = vst [vmem:[#allocation5 + $0x48] sm:$0xff] %v423_v8  ;;  %v394_v2 = vpop.permute.xlu1 %393  ;;  %v409_v4 = vpop.permute.xlu0 %408 }
 0x30b   :  { %v420_v9 = vmul.f32 %v394_v2, %v637_v20  ;;  %v421_v36 = vmul.f32 %v394_v2, %v639_v21  ;;  %v426_v37 = vmul.f32 %v409_v4, %v621_v12  ;;  %v427_v14 = vmul.f32 %v409_v4, %v623_v13 }
 0x30d   :  { %436 = vst [vmem:[#allocation5 + $0x30] sm:$0xff] %v420_v9  ;;  %437 = vst [vmem:[#allocation5 + $0x38] sm:$0xff] %v421_v36 }
 0x30e   :  { %442 = vst [vmem:[#allocation5 + $0x60] sm:$0xff] %v426_v37  ;;  %443 = vst [vmem:[#allocation5 + $0x68] sm:$0xff] %v427_v14  ;;  %v405_v0 = vpop.permute.xlu1 %404 }
 0x30f   :  { %v424_v1 = vmul.f32 %v405_v0, %v607_v5  ;;  %v425_v15 = vmul.f32 %v405_v0, %v609_v6 }
 0x311   :  { %440 = vst [vmem:[#allocation5 + $0x50] sm:$0xff] %v424_v1  ;;  %441 = vst [vmem:[#allocation5 + $0x58] sm:$0xff] %v425_v15 }
 0x312   :  { %v413_v20 = vpop.permute.xlu1 %412 }
 0x313   :  { %v428_v21 = vmul.f32 %v413_v20, %v633_v18  ;;  %v429_v12 = vmul.f32 %v413_v20, %v635_v19 }
 0x315   :  { %444 = vst [vmem:[#allocation5 + $0x70] sm:$0xff] %v428_v21  ;;  %445 = vst [vmem:[#allocation5 + $0x78] sm:$0xff] %v429_v12 }
 0x316   :  { %540 = shalt.err (!%p537_p12)
}
 0x317   :  { %s541_s11 = scalar_lea.hbm %s732_s3, 2048 }
 0x318   :  { %p542_p13 = scmp.ne.s32.totalorder %s732_s3, %s541_s11  ;;  %p545_p0 = scmp.lt.u32.totalorder %s541_s11, %s732_s3 }
 0x31a   :  { %p547_p1 = pnand %p545_p0, %p542_p13 }
 0x31c   :  { %550 = shalt.err (!%p547_p1)
}
 0x31d   :  { %457 = dma.vmem_to_hbm [thread:$0]  %s452_s7, 2048, %s732_s3, [#allocation4], %s556_s22, %s556_s22, %s557_s23  }
 0x31e   :  { %553 = dma.done.wait [#allocation4], 2048  }
 0x31f   :  { %554 = vsyncadd [#allocation4], 4294965248 }
 0x320   :  { %461 = vsyncpa [#allocation3], 1 }
 0x321   :  { %462 = vsyncpa [#allocation4], 1 }

</bundles_post_ra>
